<compile_context>
chip_gen: v7x
topology: tpu7x:2x2x1
jax: 0.10.0
libtpu: 0.0.40
codegen_flags: <defaults>
</compile_context>

<pallas_src>
import functools

import jax
import jax.numpy as jnp
from jax.experimental import pallas as pl
from jax.experimental.pallas import tpu as pltpu

EPS = 1e-6


# --------------------------------------------------------------------------
# Kernels
# --------------------------------------------------------------------------
def _rmsnorm_kernel(x_ref, w_ref, o_ref, *, eps):
    # x_ref: (tm, D) tile, w_ref: (1, D), o_ref: (tm, D)
    x = x_ref[...].astype(jnp.float32)                       # x.float()
    ms = jnp.mean(x * x, axis=-1, keepdims=True)             # mean of squares (XLU)
    normed = x * jax.lax.rsqrt(ms + eps)                     # rsqrt on EUP
    # .type_as(x) happens BEFORE the weight multiply in the torch module.
    normed = normed.astype(x_ref.dtype)
    o_ref[...] = (normed * w_ref[...].astype(x_ref.dtype)).astype(o_ref.dtype)


def _rmsnorm_lane_dense_kernel(x_ref, w_ref, o_ref, *, eps, dim):
    # x_ref: (tm, L) where L = fold*dim is a multiple of 128.  Each VMEM row
    # packs `fold` independent RMSNorm rows of width `dim` along the lane
    # axis so loads/stores are full-lane (unmasked vst).
    x = x_ref[...].astype(jnp.float32)
    lanes = x_ref.shape[-1]
    # Block-diagonal segment matrix: seg[i, j] = 1 iff lanes i and j belong
    # to the same dim-wide group.  One small f32 MXU matmul does the
    # segmented sum AND broadcasts it back across the segment's lanes.
    li = jax.lax.broadcasted_iota(jnp.int32, (lanes, lanes), 0) // dim
    lj = jax.lax.broadcasted_iota(jnp.int32, (lanes, lanes), 1) // dim
    seg = (li == lj).astype(jnp.float32)
    ms = jnp.dot(x * x, seg, preferred_element_type=jnp.float32) * (1.0 / dim)
    normed = (x * jax.lax.rsqrt(ms + eps)).astype(x_ref.dtype)
    o_ref[...] = (normed * w_ref[...].astype(x_ref.dtype)).astype(o_ref.dtype)


# --------------------------------------------------------------------------
# Generation-aware tiling policy
# --------------------------------------------------------------------------
def _tpu_vmem_and_cores():
    """Returns (physical VMEM bytes per TensorCore, TensorCores per chip)."""
    vmem = None
    cores = None
    try:
        info = pltpu.get_tpu_info()
        vmem = getattr(info, "vmem_capacity_bytes", None)
        for attr in ("num_tensorcores", "num_cores",
                     "tensorcores_per_chip", "cores_per_chip"):
            cores = getattr(info, attr, None)
            if cores:
                break
    except Exception:
        pass
    if not vmem:
        vmem = 64 * 1024 * 1024          # conservative fallback (v7x per-TC)
    if not cores:
        # Heuristic: 64 MiB/TC chips (v7x) have 2 TCs; 128 MiB chips have 1.
        cores = 2 if vmem <= 64 * 1024 * 1024 else 1
    return int(vmem), int(cores)


def _sublane_pack(dtype):
    size = jnp.dtype(dtype).itemsize
    if size >= 4:
        return 8
    if size == 2:
        return 16
    return 32


def _pick_row_tile(rows, dim, dtype, *, vmem_limit, num_cores):
    """Largest dtype-aligned row tile that fits the VMEM budget; on 2-TC
    chips also shape the step count for megacore sharding."""
    pack = _sublane_pack(dtype)
    itemsize = jnp.dtype(dtype).itemsize
    rows_padded = pl.cdiv(rows, pack) * pack

    # Per-row VMEM footprint: double-buffered input + output tiles plus one
    # f32 intermediate tile (the (tm, 1) mean/rsqrt is negligible).
    per_row_bytes = 4 * dim * itemsize + dim * 4
    budget = int(0.65 * vmem_limit)
    tm = (budget // per_row_bytes) // pack * pack
    tm = max(pack, min(tm, rows_padded))

    if num_cores >= 2 and rows_padded > pack:
        # Megacore (v7x): aim for >= 8 steps (>= 4 per TC) so both cores'
        # DMA pipelines fill, but never shrink a step below ~4 MiB of HBM
        # traffic (read + write).
        min_step_bytes = 4 * 1024 * 1024
        tm_floor = pl.cdiv(min_step_bytes, 2 * dim * itemsize)
        tm_floor = min(pl.cdiv(tm_floor, pack) * pack, rows_padded)
        tm_for_8 = max(pack, (rows_padded // 8) // pack * pack)
        tm = min(tm, max(tm_floor, tm_for_8))
        # Prefer an even step count so neither TC idles on a tail step.
        steps = pl.cdiv(rows_padded, tm)
        if steps > 1 and steps % 2 == 1:
            tm_even = max(pack, pl.cdiv(pl.cdiv(rows_padded, steps + 1), pack) * pack)
            if pl.cdiv(rows_padded, tm_even) % 2 == 0:
                tm = tm_even
    # Single-TC chips (v5e/v6e): the grid is a serial loop -> no shrink,
    # bigger steps are strictly better for an HBM-bound kernel.
    return int(tm)


# --------------------------------------------------------------------------
# Wrapper
# --------------------------------------------------------------------------
def rmsnorm(x, weight, *, eps=EPS, row_tile=None):
    """x: (..., dim), weight: (dim,). Returns same shape/dtype as x."""
    orig_shape = x.shape
    dim = orig_shape[-1]
    rows = 1
    for s in orig_shape[:-1]:
        rows *= s

    # Lane-dense fold for narrow features: keep the store lane width at 128
    # by packing `fold` rows into the lane axis.
    fold = 1
    if dim < 128 and 128 % dim == 0 and rows > 0 and rows % (128 // dim) == 0:
        fold = 128 // dim
    # TODO(synk): dim >= 128 but not a multiple of 128 still takes masked
    # partial-lane stores; a general fold/segmented path is not implemented.

    rows_k = rows // fold
    dim_k = dim * fold
    x2 = x.reshape(rows_k, dim_k)
    if fold > 1:
        w2 = jnp.tile(weight, (fold,)).reshape(1, dim_k)
        kernel = functools.partial(_rmsnorm_lane_dense_kernel, eps=eps, dim=dim)
    else:
        w2 = weight.reshape(1, dim_k)
        kernel = functools.partial(_rmsnorm_kernel, eps=eps)

    vmem_cap, num_cores = _tpu_vmem_and_cores()
    # 80% of physical VMEM leaves compiler-scratch / semaphore / weight
    # double-buffer headroom on v7x (64 MiB) while allowing ~100 MiB on
    # v5e/v6e (128 MiB physical).
    vmem_limit = min(int(0.80 * vmem_cap), 100 * 1024 * 1024)

    if row_tile is None:
        row_tile = _pick_row_tile(rows_k, dim_k, x.dtype,
                                  vmem_limit=vmem_limit, num_cores=num_cores)

    grid = (pl.cdiv(rows_k, row_tile),)  # partial last block handled by Pallas

    out = pl.pallas_call(
        kernel,
        out_shape=jax.ShapeDtypeStruct((rows_k, dim_k), x.dtype),
        grid_spec=pltpu.PrefetchScalarGridSpec(
            num_scalar_prefetch=0,
            grid=grid,
            in_specs=[
                pl.BlockSpec((row_tile, dim_k), lambda i: (i, 0)),
                pl.BlockSpec((1, dim_k), lambda i: (0, 0)),
            ],
            out_specs=pl.BlockSpec((row_tile, dim_k), lambda i: (i, 0)),
        ),
        compiler_params=pltpu.CompilerParams(
            dimension_semantics=("parallel",),
            vmem_limit_bytes=int(vmem_limit),
        ),
    )(x2, w2)
    return out.reshape(orig_shape)


# --------------------------------------------------------------------------
# Reference + demo
# --------------------------------------------------------------------------
def rmsnorm_ref(x, weight, eps=EPS):
    xf = x.astype(jnp.float32)
    ms = jnp.mean(xf * xf, axis=-1, keepdims=True)
    normed = (xf * jax.lax.rsqrt(ms + eps)).astype(x.dtype)
    return normed * weight.astype(x.dtype)


if __name__ == "__main__":
    key = jax.random.PRNGKey(0)
    k1, k2, k3, k4 = jax.random.split(key, 4)

    # (batch, seq, dim) consistent with the hawk module usage.
    batch, seq, dim = 2, 8, 128
    x = jax.random.normal(k1, (batch, seq, dim), dtype=jnp.float32)
    # Module initializes weight = ones(dim); perturb deterministically so the
    # weight multiply is actually exercised.
    weight = 1.0 + 0.1 * jax.random.normal(k2, (dim,), dtype=jnp.float32)

    out = rmsnorm(x, weight)
    jax.block_until_ready(out)
    assert out.shape == x.shape and out.dtype == x.dtype
    assert jnp.allclose(out, rmsnorm_ref(x, weight), atol=1e-5, rtol=1e-5)

    # Odd row count (3*5 = 15 rows): exercises the cdiv grid / partial-tile path.
    x_odd = jax.random.normal(k3, (3, 5, dim), dtype=jnp.float32)
    out_odd = rmsnorm(x_odd, weight)
    jax.block_until_ready(out_odd)
    assert jnp.allclose(out_odd, rmsnorm_ref(x_odd, weight),
                        atol=1e-5, rtol=1e-5)

    # Narrow-feature lane-dense path: dim=32 folds 4 rows into 128 lanes.
    dim_s = 32
    x_s = jax.random.normal(k4, (2, 8, dim_s), dtype=jnp.float32)
    w_s = 1.0 + 0.1 * jax.random.normal(k2, (dim_s,), dtype=jnp.float32)
    out_s = rmsnorm(x_s, w_s)
    jax.block_until_ready(out_s)
    assert jnp.allclose(out_s, rmsnorm_ref(x_s, w_s), atol=1e-5, rtol=1e-5)

    # bf16 activations (weight in the same parameter dtype).
    x_bf = x.astype(jnp.bfloat16)
    w_bf = weight.astype(jnp.bfloat16)
    out_bf = rmsnorm(x_bf, w_bf)
    jax.block_until_ready(out_bf)
    assert out_bf.dtype == jnp.bfloat16
    assert jnp.allclose(out_bf.astype(jnp.float32),
                        rmsnorm_ref(x_bf, w_bf).astype(jnp.float32),
                        atol=2e-2, rtol=2e-2)

    print("KERNEL_OK")
</pallas_src>

<mosaic_0001>
module attributes {stable_mosaic.version = 11 : i64} {
  func.func @_rmsnorm_kernel(%arg0: i32, %arg1: memref<16x128xf32, #tpu.memory_space<vmem>>, %arg2: memref<1x128xf32, #tpu.memory_space<vmem>>, %arg3: memref<16x128xf32, #tpu.memory_space<vmem>>) attributes {dimension_semantics = [#tpu.dimension_semantics<parallel>], iteration_bounds = array<i64: 1>, scalar_prefetch = 0 : i64, scratch_operands = 0 : i64, tpu.core_type = #tpu.core_type<tc>, window_params = [{transform_indices = @transform_0, window_bounds = array<i64: 16, 128>}, {pipeline_mode = #tpu.pipeline_mode<synchronous>, transform_indices = @transform_1, window_bounds = array<i64: 1, 128>}, {transform_indices = @transform_2, window_bounds = array<i64: 16, 128>}]} {
    %c0 = arith.constant 0 : index
    %c0_0 = arith.constant 0 : index
    %0 = vector.load %arg1[%c0, %c0_0] : memref<16x128xf32, #tpu.memory_space<vmem>>, vector<16x128xf32>
    %1 = arith.mulf %0, %0 : vector<16x128xf32>
    %cst = arith.constant dense<0.000000e+00> : vector<16xf32>
    %2 = vector.multi_reduction <add>, %1, %cst [1] : vector<16x128xf32> to vector<16xf32>
    %3 = vector.shape_cast %2 : vector<16xf32> to vector<16x1xf32>
    %cst_1 = arith.constant 1.280000e+02 : f32
    %4 = vector.broadcast %cst_1 : f32 to vector<16x1xf32>
    %5 = arith.divf %3, %4 : vector<16x1xf32>
    %cst_2 = arith.constant 9.99999997E-7 : f32
    %6 = vector.broadcast %cst_2 : f32 to vector<16x1xf32>
    %7 = arith.addf %5, %6 : vector<16x1xf32>
    %8 = math.rsqrt %7 : vector<16x1xf32>
    %9 = vector.broadcast %8 : vector<16x1xf32> to vector<16x128xf32>
    %10 = arith.mulf %0, %9 : vector<16x128xf32>
    %c0_3 = arith.constant 0 : index
    %c0_4 = arith.constant 0 : index
    %11 = vector.load %arg2[%c0_3, %c0_4] : memref<1x128xf32, #tpu.memory_space<vmem>>, vector<1x128xf32>
    %12 = vector.broadcast %11 : vector<1x128xf32> to vector<16x128xf32>
    %13 = arith.mulf %10, %12 : vector<16x128xf32>
    %c0_5 = arith.constant 0 : index
    %c0_6 = arith.constant 0 : index
    %14 = vector.load %arg3[%c0_5, %c0_6] : memref<16x128xf32, #tpu.memory_space<vmem>>, vector<16x128xf32>
    tpu.vector_store %arg3[%c0_5, %c0_6], %13 {strides = array<i32>} : memref<16x128xf32, #tpu.memory_space<vmem>>, vector<16x128xf32>,
    return
  }
  func.func @transform_0(%arg0: i32) -> (i32, i32) {
    %c0_i32 = arith.constant 0 : i32
    %c0_i32_0 = arith.constant 0 : i32
    return %arg0, %c0_i32 : i32, i32
  }
  func.func @transform_1(%arg0: i32) -> (i32, i32) {
    %c0_i32 = arith.constant 0 : i32
    %c0_i32_0 = arith.constant 0 : i32
    %c0_i32_1 = arith.constant 0 : i32
    return %c0_i32, %c0_i32_0 : i32, i32
  }
  func.func @transform_2(%arg0: i32) -> (i32, i32) {
    %c0_i32 = arith.constant 0 : i32
    %c0_i32_0 = arith.constant 0 : i32
    return %arg0, %c0_i32 : i32, i32
  }
}

</mosaic_0001>

<bundles_post_ra>
// kernel: tpu_custom_call.1
= control target key start
LH: loop header
LB: loop body
LE: loop exit
PB: predicated region body
PF: predicated region fallthrough
CT: control target
= control target key end

     0   :  { %7 = vsyncpa [#allocation3], 0  ;;  %s180_s0 = inlined_call_operand.hbm [shape: f32[16,128], index: 0, kind: input, shape index: {}]   ;;  %s181_s1 = inlined_call_operand.vmem [shape: f32[1,128], index: 1, kind: input, shape index: {}]   ;;  %s182_s2 = inlined_call_operand.hbm [shape: f32[16,128], index: 2, kind: output, shape index: {}]  }
   0x1   :  { %8 = vsyncpa [#allocation4], 0  ;;  %s128_s9 = smov [#allocation2]   ;;  %s80_s13 = scalar_lea.hbm %s180_s0, 256 }
   0x2   :  { %s14_s10 = sshll.u32 %s128_s9, 4  ;;  %p81_p0 = scmp.ne.s32.totalorder %s180_s0, %s80_s13  ;;  %s15_s10 = int_to_ptr.vmem [resolvable:$true] %s14_s10 }
   0x3   :  { %p84_p1 = scmp.lt.u32.totalorder %s80_s13, %s180_s0 }
   0x5   :  { %p86_p2 = pnand %p84_p1, %p81_p0 }
   0x7   :  { %89 = shalt.err (!%p86_p2)
}
   0x8   :  { %s90_s18 = scalar_lea.vmem %s15_s10, 256  ;;  %p95_p4 = scmp.lt.s32.totalorder %s15_s10, %s15_s10 }
   0x9   :  { %p91_p3 = scmp.ne.s32.totalorder %s15_s10, %s90_s18  ;;  %p96_p5 = scmp.lt.s32.totalorder %s90_s18, %s90_s18 }
   0xb   :  { %p97_p6 = por %p96_p5, %p95_p4 }
   0xd   :  { %p98_p7 = pnand %p97_p6, %p91_p3 }
   0xf   :  { %101 = shalt.err (!%p98_p7)
}
  0x10   :  { %s129_s19 = smov 128   ;;  %s130_s20 = smov 8  }
  0x11   :  { %20 = dma.hbm_to_vmem [thread:$0]  %s180_s0, 256, %s15_s10, [#allocation3], %s129_s19, %s129_s19, %s130_s20  }
  0x12   :  { %124 = dma.done.wait [#allocation3], 256  }
  0x13   :  { %125 = vsyncadd [#allocation3], 4294967040  ;;  %v26_v0 = vld [vmem:[#allocation2] sm:$0xff]  ;;  %v27_v1 = vld [vmem:[#allocation2 + $0x8] sm:$0xff]  ;;  %s131_s0 = smov [#allocation5]  }
  0x14   :  { %v28_v2 = vmul.f32 %v26_v0, %v26_v0  ;;  %v29_v3 = vmul.f32 %v27_v1, %v27_v1  ;;  %v71_v11 = vld [vmem:[%s181_s1] ss:$0 sm:$0xff]  ;;  %s59_s25 = sshll.u32 %s131_s0, 4  ;;  %s60_s25 = int_to_ptr.vmem [resolvable:$true] %s59_s25 }
  0x15   :  { %s102_s26 = scalar_lea.vmem %s60_s25, 256  ;;  %p107_p9 = scmp.lt.s32.totalorder %s60_s25, %s60_s25 }
  0x16   :  { %30 = vadd.xlane.f32.xlu0 %v28_v2  ;;  %p103_p8 = scmp.ne.s32.totalorder %s60_s25, %s102_s26  ;;  %p108_p10 = scmp.lt.s32.totalorder %s102_s26, %s102_s26 }
  0x18   :  { %p109_p11 = por %p108_p10, %p107_p9 }
  0x1a   :  { %32 = vadd.xlane.f32.xlu0 %v29_v3  ;;  %p110_p12 = pnand %p109_p11, %p103_p8 }
  0xa3   :  { %v31_v4 = vpop.xlane.xlu0 %30 }
  0xa4   :  { %v35_v5 = vmul.f32 0.0078125, %v31_v4 }
  0xa6   :  { %v37_v6 = vadd.f32 1e-06, %v35_v5 }
  0xa7   :  { %v33_v7 = vpop.xlane.xlu0 %32 }
  0xa8   :  { %76 = vrsqrt.f32 %v37_v6  ;;  %v36_v8 = vmul.f32 0.0078125, %v33_v7 }
  0xaa   :  { %v38_v9 = vadd.f32 1e-06, %v36_v8 }
  0xac   :  { %78 = vrsqrt.f32 %v38_v9 }
  0xb2   :  { %v77_v10 = vpop.eup %76 }
  0xb3   :  { %v41_v12 = vmul.f32 %v77_v10, %v26_v0 }
  0xb5   :  { %v50_v13 = vmul.f32 %v71_v11, %v41_v12 }
  0xb6   :  { %v79_v14 = vpop.eup %78 }
  0xb7   :  { %v42_v15 = vmul.f32 %v79_v14, %v27_v1  ;;  %52 = vst [vmem:[#allocation5] sm:$0xff] %v50_v13 }
  0xb9   :  { %v51_v16 = vmul.f32 %v71_v11, %v42_v15 }
  0xbb   :  { %53 = vst [vmem:[#allocation5 + $0x8] sm:$0xff] %v51_v16 }
  0xbc   :  { %113 = shalt.err (!%p110_p12)
}
  0xbd   :  { %s114_s1 = scalar_lea.hbm %s182_s2, 256 }
  0xbe   :  { %p115_p13 = scmp.ne.s32.totalorder %s182_s2, %s114_s1  ;;  %p118_p0 = scmp.lt.u32.totalorder %s114_s1, %s182_s2 }
  0xc0   :  { %p120_p1 = pnand %p118_p0, %p115_p13 }
  0xc2   :  { %123 = shalt.err (!%p120_p1)
}
  0xc3   :  { %65 = dma.vmem_to_hbm [thread:$0]  %s60_s25, 256, %s182_s2, [#allocation4], %s129_s19, %s129_s19, %s130_s20  }
  0xc4   :  { %126 = dma.done.wait [#allocation4], 256  }
  0xc5   :  { %127 = vsyncadd [#allocation4], 4294967040 }
  0xc6   :  { %69 = vsyncpa [#allocation3], 1 }
  0xc7   :  { %70 = vsyncpa [#allocation4], 1 }

</bundles_post_ra>
